<compile_context>
chip_gen: v6e
topology: v6e:2x2x1
jax: 0.10.0
libtpu: 0.0.40
codegen_flags: <defaults>
</compile_context>

<pallas_src>
import jax
import jax.numpy as jnp
from jax.experimental import pallas as pl
from jax.experimental.pallas import tpu as pltpu  # noqa: F401  (kept for TPU backend symmetry)

EPS = 0.003  # torch.nn.LayerNorm([6, 6], 0.003) -> eps = 0.003


def _ln_kernel(x_ref, o_ref):
    # x_ref: (R, HW) — normalize each row over the last axis.
    x = x_ref[...].astype(jnp.float32)
    hw = x.shape[-1]
    inv_hw = 1.0 / hw
    s1 = jnp.sum(x, axis=-1, keepdims=True)          # (R, 1)
    s2 = jnp.sum(x * x, axis=-1, keepdims=True)      # (R, 1)
    mean = s1 * inv_hw
    var = jnp.maximum(s2 * inv_hw - mean * mean, 0.0)  # clamp: avoid rsqrt(<0)
    inv = jax.lax.rsqrt(var + EPS)                     # EUP
    o_ref[...] = ((x - mean) * inv).astype(o_ref.dtype)


def layernorm2d(x):
    """LayerNorm over the last two dims of an NCHW tensor, eps=EPS.

    Single whole-array VMEM block (no grid): appropriate for the model's
    tiny (1, 2, 6, 6) input.  The (N*C, H*W) reshape of a contiguous NCHW
    tensor is free (no data movement).
    """
    N, C, H, W = x.shape
    R, HW = N * C, H * W
    x2d = x.reshape(R, HW)
    out = pl.pallas_call(
        _ln_kernel,
        out_shape=jax.ShapeDtypeStruct((R, HW), x.dtype),
    )(x2d)
    return out.reshape(N, C, H, W)


class Model:
    def __init__(self):
        # LayerNorm([6, 6]) default affine init: weight = ones, bias = zeros.
        # Identity affine is folded away (semantics unchanged at init).
        self.ln_weight = jnp.ones((6, 6), jnp.float32)
        self.ln_bias = jnp.zeros((6, 6), jnp.float32)
        # conv1 parameters exist in the torch module but its output is unused.

    def __call__(self, x1):
        s = layernorm2d(x1)
        return s


if __name__ == "__main__":
    key = jax.random.PRNGKey(0)
    x1 = jax.random.normal(key, (1, 2, 6, 6), dtype=jnp.float32)

    model = Model()
    out = model(x1)
    out = jax.block_until_ready(out)

    # sanity check against plain-JAX layernorm
    mean = jnp.mean(x1, axis=(-2, -1), keepdims=True)
    var = jnp.mean((x1 - mean) ** 2, axis=(-2, -1), keepdims=True)
    ref = (x1 - mean) / jnp.sqrt(var + EPS)
    assert out.shape == (1, 2, 6, 6)
    assert jnp.max(jnp.abs(out - ref)) < 1e-5

    print("KERNEL_OK")
</pallas_src>

<mosaic_0001>
module attributes {stable_mosaic.version = 11 : i64} {
  func.func @_ln_kernel(%arg0: memref<2x36xf32, #tpu.memory_space<vmem>>, %arg1: memref<2x36xf32, #tpu.memory_space<vmem>>) attributes {dimension_semantics = [], scalar_prefetch = 0 : i64, scratch_operands = 0 : i64, tpu.core_type = #tpu.core_type<tc>} {
    %c0 = arith.constant 0 : index
    %c0_0 = arith.constant 0 : index
    %0 = vector.load %arg0[%c0, %c0_0] : memref<2x36xf32, #tpu.memory_space<vmem>>, vector<2x36xf32>
    %cst = arith.constant dense<0.000000e+00> : vector<2xf32>
    %1 = vector.multi_reduction <add>, %0, %cst [1] : vector<2x36xf32> to vector<2xf32>
    %2 = vector.shape_cast %1 : vector<2xf32> to vector<2x1xf32>
    %3 = arith.mulf %0, %0 : vector<2x36xf32>
    %cst_1 = arith.constant dense<0.000000e+00> : vector<2xf32>
    %4 = vector.multi_reduction <add>, %3, %cst_1 [1] : vector<2x36xf32> to vector<2xf32>
    %5 = vector.shape_cast %4 : vector<2xf32> to vector<2x1xf32>
    %cst_2 = arith.constant 0.027777778 : f32
    %6 = vector.broadcast %cst_2 : f32 to vector<2x1xf32>
    %7 = arith.mulf %2, %6 : vector<2x1xf32>
    %cst_3 = arith.constant 0.027777778 : f32
    %8 = vector.broadcast %cst_3 : f32 to vector<2x1xf32>
    %9 = arith.mulf %5, %8 : vector<2x1xf32>
    %10 = arith.mulf %7, %7 : vector<2x1xf32>
    %11 = arith.subf %9, %10 : vector<2x1xf32>
    %cst_4 = arith.constant 0.000000e+00 : f32
    %12 = vector.broadcast %cst_4 : f32 to vector<2x1xf32>
    %13 = arith.maximumf %11, %12 : vector<2x1xf32>
    %cst_5 = arith.constant 3.000000e-03 : f32
    %14 = vector.broadcast %cst_5 : f32 to vector<2x1xf32>
    %15 = arith.addf %13, %14 : vector<2x1xf32>
    %16 = math.rsqrt %15 : vector<2x1xf32>
    %17 = vector.broadcast %7 : vector<2x1xf32> to vector<2x36xf32>
    %18 = arith.subf %0, %17 : vector<2x36xf32>
    %19 = vector.broadcast %16 : vector<2x1xf32> to vector<2x36xf32>
    %20 = arith.mulf %18, %19 : vector<2x36xf32>
    %c0_6 = arith.constant 0 : index
    %c0_7 = arith.constant 0 : index
    %21 = vector.load %arg1[%c0_6, %c0_7] : memref<2x36xf32, #tpu.memory_space<vmem>>, vector<2x36xf32>
    tpu.vector_store %arg1[%c0_6, %c0_7], %20 {strides = array<i32>} : memref<2x36xf32, #tpu.memory_space<vmem>>, vector<2x36xf32>,
    return
  }
}

</mosaic_0001>

<bundles_post_ra>
// kernel: tpu_custom_call.1
= control target key start
LH: loop header
LB: loop body
LE: loop exit
PB: predicated region body
PF: predicated region fallthrough
CT: control target
= control target key end

     0   :  { %6 = vsyncpa [#allocation3], 0  ;;  %s124_s0 = inlined_call_operand.hbm [shape: f32[2,36], index: 0, kind: input, shape index: {}]   ;;  %s125_s1 = inlined_call_operand.hbm [shape: f32[2,36], index: 1, kind: output, shape index: {}]  }
   0x1   :  { %7 = vsyncpa [#allocation4], 0  ;;  %s103_s6 = smov [#allocation2]  }
   0x2   :  { %s14_s7 = sshll.u32 %s103_s6, 4  ;;  %s15_s7 = int_to_ptr.vmem [resolvable:$true] %s14_s7 }
   0x3   :  { %s67_s8 = scalar_lea.vmem %s15_s7, 32  ;;  %p72_p1 = scmp.lt.s32.totalorder %s15_s7, %s15_s7 }
   0x4   :  { %p68_p0 = scmp.ne.s32.totalorder %s15_s7, %s67_s8  ;;  %p73_p2 = scmp.lt.s32.totalorder %s67_s8, %s67_s8 }
   0x6   :  { %p74_p3 = por %p73_p2, %p72_p1 }
   0x8   :  { %p75_p4 = pnand %p74_p3, %p68_p0 }
   0xa   :  { %78 = shalt.err (!%p75_p4)
}
   0xb   :  { %17 = dma.hbm_to_vmem [thread:$0]  %s124_s0, 32, %s15_s7, [#allocation3]  }
   0xc   :  { %99 = dma.done.wait [#allocation3], 32  }
   0xd   :  { %100 = vsyncadd [#allocation3], 4294967264  ;;  %vm22_vm0 = vcmask 287744   ;;  %v21_v0 = vld [vmem:[#allocation2] sm:$0x3]  ;;  %s104_s0 = smov [#allocation5]  }
   0xe   :  { %v23_v1 = vsel %vm22_vm0, %v21_v0, 0.0  ;;  %v26_v2 = vmul.f32 %v21_v0, %v21_v0  ;;  %s46_s11 = sshll.u32 %s104_s0, 4  ;;  %s47_s11 = int_to_ptr.vmem [resolvable:$true] %s46_s11 }
   0xf   :  { %24 = vadd.xlane.f32.xlu0 %v23_v1  ;;  %s79_s12 = scalar_lea.vmem %s47_s11, 32  ;;  %p84_p6 = scmp.lt.s32.totalorder %s47_s11, %s47_s11 }
  0x10   :  { %v27_v3 = vsel %vm22_vm0, %v26_v2, 0.0  ;;  %p80_p5 = scmp.ne.s32.totalorder %s47_s11, %s79_s12  ;;  %p85_p7 = scmp.lt.s32.totalorder %s79_s12, %s79_s12 }
  0x12   :  { %p86_p8 = por %p85_p7, %p84_p6 }
  0x13   :  { %28 = vadd.xlane.f32.xlu0 %v27_v3 }
  0x14   :  { %p87_p9 = pnand %p86_p8, %p80_p5 }
  0x98   :  { %v25_v4 = vpop.xlane.xlu0 %24 }
  0x99   :  { %v30_v5 = vmul.f32 0.027777778, %v25_v4 }
  0x9b   :  { %v32_v7 = vmul.f32 %v30_v5, %v30_v5  ;;  %v37_v12 = vsub.f32 %v21_v0, %v30_v5 }
  0x9c   :  { %v29_v6 = vpop.xlane.xlu0 %28 }
  0x9d   :  { %v31_v8 = vmul.f32 0.027777778, %v29_v6 }
  0x9f   :  { %v33_v9 = vsub.f32 %v31_v8, %v32_v7 }
  0xa1   :  { %v34_v10 = vmax.f32 %v33_v9, 0.0 }
  0xa3   :  { %v35_v11 = vadd.f32 0.003, %v34_v10 }
  0xa5   :  { %57 = vrsqrt.f32 %v35_v11 }
  0xb2   :  { %v58_v13 = vpop.eup %57 }
  0xb3   :  { %v38_v14 = vmul.f32 %v58_v13, %v37_v12 }
  0xb5   :  { %39 = vst.msk [vmem:[#allocation5] sm:$0x3] %vm22_vm0, %v38_v14 }
  0xb6   :  { %90 = shalt.err (!%p87_p9)
}
  0xb7   :  { %49 = dma.vmem_to_hbm [thread:$0]  %s47_s11, 32, %s125_s1, [#allocation4]  }
  0xb8   :  { %101 = dma.done.wait [#allocation4], 32  }
  0xb9   :  { %102 = vsyncadd [#allocation4], 4294967264 }
  0xba   :  { %53 = vsyncpa [#allocation3], 1 }
  0xbb   :  { %54 = vsyncpa [#allocation4], 1 }

</bundles_post_ra>
